<compile_context>
chip_gen: v7x
topology: tpu7x:2x2x1
jax: 0.10.0
libtpu: 0.0.40
codegen_flags: <defaults>
</compile_context>

<pallas_src>
import functools

import jax
import jax.numpy as jnp
from jax.experimental import pallas as pl
from jax.experimental.pallas import tpu as pltpu


def mlp_kernel(x_ref, w1_ref, b1_ref, w2_ref, b2_ref, w3_ref, b3_ref, o_ref,
               *, tanh_dtype):
    """Fused 3-layer MLP forward for one batch tile, resident in VMEM.

    x arrives in its original dtype (f32) and is cast to the MXU dtype inside
    the kernel.  Matmuls accumulate in f32 on the MXU; tanh runs on the EUP in
    `tanh_dtype` (bf16 on v6e/v7x, f32 on v5e / exact-f32 path); bias adds are
    f32 VPU filler under the MXU.

    Ragged last batch tile: Pallas masks the output writeback, so tanh over
    padded garbage rows is harmless -- do not "fix" this by reading o_ref.
    """
    mxu_dtype = w1_ref.dtype
    x = x_ref[...].astype(mxu_dtype)          # in-kernel cast: free VPU filler

    # Layer 1: Linear + Tanh
    z1 = jnp.dot(x, w1_ref[...], preferred_element_type=jnp.float32) + b1_ref[...]
    h1 = jnp.tanh(z1.astype(tanh_dtype))

    # Layer 2: Linear + Tanh
    z2 = jnp.dot(h1.astype(mxu_dtype), w2_ref[...],
                 preferred_element_type=jnp.float32) + b2_ref[...]
    h2 = jnp.tanh(z2.astype(tanh_dtype))

    # Layer 3: Linear (Identity output activation)
    out = jnp.dot(h2.astype(mxu_dtype), w3_ref[...],
                  preferred_element_type=jnp.float32) + b3_ref[...]
    o_ref[...] = out.astype(o_ref.dtype)


def _tpu_generation():
    """Best-effort chip generation string ('v5', 'v6', 'v7', ...) or None."""
    try:
        kind = jax.devices()[0].device_kind.lower()
    except Exception:
        return None
    for gen in ("v7", "v6", "v5", "v4", "v3", "v2"):
        if gen in kind:
            return gen
    return None


def _padded_tile_bytes(rows, cols, dtype):
    """VMEM bytes for a (rows, cols) array after (sublane, 128-lane) padding."""
    itemsize = jnp.dtype(dtype).itemsize
    sublane = max(8, 32 // itemsize)          # 8 for f32, 16 for bf16
    pr = -(-rows // sublane) * sublane
    pc = -(-cols // 128) * 128
    return pr * pc * itemsize


@functools.partial(jax.jit, static_argnames=("block_batch", "mxu_dtype"))
def mlp_regression_forward(x, params, *, block_batch=None,
                           mxu_dtype=jnp.bfloat16):
    """x: [batch, input_dim] -> [batch, output_dim] (f32 output)."""
    w1, b1, w2, b2, w3, b3 = params
    batch, input_dim = x.shape
    h1_dim = w1.shape[1]
    h2_dim = w2.shape[1]
    output_dim = w3.shape[1]

    gen = _tpu_generation()
    is_v7 = gen == "v7"
    is_v5 = gen == "v5"

    # ---- batch tile selection -------------------------------------------
    # Big tiles amortize the ~0.35 us per-grid-step overhead; clamp so large
    # batches keep >=4 grid steps (v7x megacore sharding + DMA pipelining).
    if block_batch is None:
        block_batch = 4096 if is_v5 else 8192
        min_steps = 4
        if batch >= min_steps * 8:
            per_step = -(-batch // min_steps)         # cdiv(batch, 4)
            per_step = -(-per_step // 8) * 8          # round up to 8
            block_batch = min(block_batch, per_step)
    block_batch = min(block_batch, batch)
    if block_batch != batch:
        # (8,128) rule applies to the second-to-last dim of x/out blocks.
        assert block_batch % 8 == 0, "block_batch must be a multiple of 8"

    # ---- VMEM footprint (128-lane padding + in-kernel intermediates) -----
    scoped_default = (16 << 20) if is_v5 else (32 << 20)
    vmem_cap = (48 << 20) if is_v7 else (100 << 20)   # v7x: 64 MiB physical

    def footprint(bb):
        io = 2 * (_padded_tile_bytes(bb, input_dim, jnp.float32)       # x tile
                  + _padded_tile_bytes(bb, output_dim, jnp.float32))   # out tile
        io += 2 * (_padded_tile_bytes(input_dim, h1_dim, mxu_dtype)
                   + _padded_tile_bytes(h1_dim, h2_dim, mxu_dtype)
                   + _padded_tile_bytes(h2_dim, output_dim, mxu_dtype)
                   + _padded_tile_bytes(1, h1_dim, jnp.float32)
                   + _padded_tile_bytes(1, h2_dim, jnp.float32)
                   + _padded_tile_bytes(1, output_dim, jnp.float32))
        # In-kernel temporaries (all lane-padded to 128): x cast (bf16),
        # z1/z2 (f32), h1/h2 (<=f32), bf16 casts feeding layers 2/3.
        inter = bb * 128 * (2 + 4 + 4 + 2 + 2 + 2)
        return io + inter

    vmem_bytes = footprint(block_batch)
    # Shrink the tile if it can't fit even a raised limit.
    while (vmem_bytes > int(0.85 * vmem_cap) and block_batch > 512
           and block_batch % 8 == 0):
        block_batch = max(8, (block_batch // 2 // 8) * 8)
        vmem_bytes = footprint(block_batch)

    vmem_limit = None
    if vmem_bytes > int(0.85 * scoped_default):
        vmem_limit = min(int(vmem_bytes * 1.5) + (1 << 20), vmem_cap)

    # ---- dtypes -----------------------------------------------------------
    mxu_is_bf16 = jnp.dtype(mxu_dtype) == jnp.dtype(jnp.bfloat16)
    # bf16 EUP on v6e/v7x (~2x tanh throughput); v5e has no bf16 EUP/VPU.
    tanh_dtype = jnp.bfloat16 if (mxu_is_bf16 and gen in ("v6", "v7")) \
        else jnp.float32

    # Weights are tiny (64x64): the one-time wrapper cast is negligible.
    w1c, w2c, w3c = (w.astype(mxu_dtype) for w in (w1, w2, w3))
    b1c, b2c, b3c = (b.astype(jnp.float32).reshape(1, -1) for b in (b1, b2, b3))

    w_elems = input_dim * h1_dim + h1_dim * h2_dim + h2_dim * output_dim
    cost = pl.CostEstimate(
        flops=2 * batch * w_elems,
        transcendentals=batch * (h1_dim + h2_dim),
        bytes_accessed=(batch * input_dim * 4                       # x (f32)
                        + w_elems * jnp.dtype(mxu_dtype).itemsize   # weights
                        + (h1_dim + h2_dim + output_dim) * 4        # biases
                        + batch * output_dim * 4),                  # output
    )

    grid = (pl.cdiv(batch, block_batch),)
    kernel = functools.partial(mlp_kernel, tanh_dtype=tanh_dtype)

    return pl.pallas_call(
        kernel,
        out_shape=jax.ShapeDtypeStruct((batch, output_dim), jnp.float32),
        grid=grid,
        in_specs=[
            pl.BlockSpec((block_batch, input_dim), lambda i: (i, 0)),
            pl.BlockSpec((input_dim, h1_dim), lambda i: (0, 0)),
            pl.BlockSpec((1, h1_dim), lambda i: (0, 0)),
            pl.BlockSpec((h1_dim, h2_dim), lambda i: (0, 0)),
            pl.BlockSpec((1, h2_dim), lambda i: (0, 0)),
            pl.BlockSpec((h2_dim, output_dim), lambda i: (0, 0)),
            pl.BlockSpec((1, output_dim), lambda i: (0, 0)),
        ],
        out_specs=pl.BlockSpec((block_batch, output_dim), lambda i: (i, 0)),
        compiler_params=pltpu.CompilerParams(
            dimension_semantics=("parallel",),   # shards grid over TCs on v7x
            vmem_limit_bytes=vmem_limit,
        ),
        cost_estimate=cost,
    )(x, w1c, b1c, w2c, b2c, w3c, b3c)


def init_mlp_params(key, input_dim, output_dim, hidden_sizes=(64, 64),
                    dtype=jnp.float32):
    """Deterministic init mimicking nn.Linear's default U(-1/sqrt(fan_in), +)."""
    sizes = [input_dim] + list(hidden_sizes) + [output_dim]
    params = []
    for i in range(len(sizes) - 1):
        fan_in, fan_out = sizes[i], sizes[i + 1]
        key, wk, bk = jax.random.split(key, 3)
        bound = 1.0 / (fan_in ** 0.5)
        w = jax.random.uniform(wk, (fan_in, fan_out), dtype, -bound, bound)
        b = jax.random.uniform(bk, (1, fan_out), dtype, -bound, bound)
        params += [w, b]
    return tuple(params)


def mlp_reference(x, params):
    """Plain-JAX f32 reference for correctness checks."""
    w1, b1, w2, b2, w3, b3 = params
    h1 = jnp.tanh(x @ w1 + b1)
    h2 = jnp.tanh(h1 @ w2 + b2)
    return h2 @ w3 + b3


if __name__ == "__main__":
    key = jax.random.PRNGKey(0)

    input_dim, output_dim = 16, 4
    hidden_sizes = (64, 64)

    key, pkey = jax.random.split(key)
    params = init_mlp_params(pkey, input_dim, output_dim, hidden_sizes)

    # Small-shape sanity check (single tile), default bf16 MXU path.
    key, xk1 = jax.random.split(key)
    x_small = jax.random.normal(xk1, (8, input_dim), jnp.float32)
    out_small = jax.block_until_ready(mlp_regression_forward(x_small, params))
    ref_small = mlp_reference(x_small, params)
    assert out_small.shape == (8, output_dim)
    assert jnp.allclose(out_small, ref_small, atol=5e-2, rtol=5e-2)

    # Multi-tile check via the default adaptive tiling: batch=64 ->
    # block_batch=16 -> 4 grid steps (pipelining + v7x megacore engage).
    key, xk2 = jax.random.split(key)
    x_big = jax.random.normal(xk2, (64, input_dim), jnp.float32)
    out_big = jax.block_until_ready(mlp_regression_forward(x_big, params))
    ref_big = mlp_reference(x_big, params)
    assert out_big.shape == (64, output_dim)
    assert jnp.allclose(out_big, ref_big, atol=5e-2, rtol=5e-2)

    # Explicit user tile (must be a multiple of 8 when < batch).
    out_big2 = jax.block_until_ready(
        mlp_regression_forward(x_big, params, block_batch=32))
    assert jnp.allclose(out_big2, ref_big, atol=5e-2, rtol=5e-2)

    # Exact f32 MXU path must match the reference tightly.
    out_f32 = jax.block_until_ready(
        mlp_regression_forward(x_small, params, mxu_dtype=jnp.float32))
    assert jnp.allclose(out_f32, ref_small, atol=1e-5, rtol=1e-5)

    print("KERNEL_OK")
</pallas_src>

<mosaic_0001>
module attributes {stable_mosaic.version = 11 : i64} {
  func.func @mlp_kernel(%arg0: i32, %arg1: memref<8x16xf32, #tpu.memory_space<vmem>>, %arg2: memref<16x64xbf16, #tpu.memory_space<vmem>>, %arg3: memref<1x64xf32, #tpu.memory_space<vmem>>, %arg4: memref<64x64xbf16, #tpu.memory_space<vmem>>, %arg5: memref<1x64xf32, #tpu.memory_space<vmem>>, %arg6: memref<64x4xbf16, #tpu.memory_space<vmem>>, %arg7: memref<1x4xf32, #tpu.memory_space<vmem>>, %arg8: memref<8x4xf32, #tpu.memory_space<vmem>>) attributes {dimension_semantics = [#tpu.dimension_semantics<parallel>], iteration_bounds = array<i64: 1>, scalar_prefetch = 0 : i64, scratch_operands = 0 : i64, tpu.core_type = #tpu.core_type<tc>, window_params = [{transform_indices = @transform_0, window_bounds = array<i64: 8, 16>}, {pipeline_mode = #tpu.pipeline_mode<synchronous>, transform_indices = @transform_1, window_bounds = array<i64: 16, 64>}, {pipeline_mode = #tpu.pipeline_mode<synchronous>, transform_indices = @transform_2, window_bounds = array<i64: 1, 64>}, {pipeline_mode = #tpu.pipeline_mode<synchronous>, transform_indices = @transform_3, window_bounds = array<i64: 64, 64>}, {pipeline_mode = #tpu.pipeline_mode<synchronous>, transform_indices = @transform_4, window_bounds = array<i64: 1, 64>}, {pipeline_mode = #tpu.pipeline_mode<synchronous>, transform_indices = @transform_5, window_bounds = array<i64: 64, 4>}, {pipeline_mode = #tpu.pipeline_mode<synchronous>, transform_indices = @transform_6, window_bounds = array<i64: 1, 4>}, {transform_indices = @transform_7, window_bounds = array<i64: 8, 4>}]} {
    %c0 = arith.constant 0 : index
    %c0_0 = arith.constant 0 : index
    %0 = vector.load %arg1[%c0, %c0_0] : memref<8x16xf32, #tpu.memory_space<vmem>>, vector<8x16xf32>
    %1 = arith.truncf %0 : vector<8x16xf32> to vector<8x16xbf16>
    %c0_1 = arith.constant 0 : index
    %c0_2 = arith.constant 0 : index
    %2 = vector.load %arg2[%c0_1, %c0_2] : memref<16x64xbf16, #tpu.memory_space<vmem>>, vector<16x64xbf16>
    %cst = arith.constant dense<0.000000e+00> : vector<8x64xf32>
    %3 = tpu.matmul %1, %2, %cst {dimension_numbers = #tpu.dot_dimension_numbers<[1], [0], [0], [1], [0, 0, 1, 1], [], []>} : vector<8x16xbf16>, vector<16x64xbf16>, vector<8x64xf32> -> vector<8x64xf32>
    %c0_3 = arith.constant 0 : index
    %c0_4 = arith.constant 0 : index
    %4 = vector.load %arg3[%c0_3, %c0_4] : memref<1x64xf32, #tpu.memory_space<vmem>>, vector<1x64xf32>
    %5 = vector.broadcast %4 : vector<1x64xf32> to vector<8x64xf32>
    %6 = arith.addf %3, %5 : vector<8x64xf32>
    %7 = math.tanh %6 : vector<8x64xf32>
    %8 = arith.truncf %7 : vector<8x64xf32> to vector<8x64xbf16>
    %c0_5 = arith.constant 0 : index
    %c0_6 = arith.constant 0 : index
    %9 = vector.load %arg4[%c0_5, %c0_6] : memref<64x64xbf16, #tpu.memory_space<vmem>>, vector<64x64xbf16>
    %cst_7 = arith.constant dense<0.000000e+00> : vector<8x64xf32>
    %10 = tpu.matmul %8, %9, %cst_7 {dimension_numbers = #tpu.dot_dimension_numbers<[1], [0], [0], [1], [0, 0, 1, 1], [], []>} : vector<8x64xbf16>, vector<64x64xbf16>, vector<8x64xf32> -> vector<8x64xf32>
    %c0_8 = arith.constant 0 : index
    %c0_9 = arith.constant 0 : index
    %11 = vector.load %arg5[%c0_8, %c0_9] : memref<1x64xf32, #tpu.memory_space<vmem>>, vector<1x64xf32>
    %12 = vector.broadcast %11 : vector<1x64xf32> to vector<8x64xf32>
    %13 = arith.addf %10, %12 : vector<8x64xf32>
    %14 = math.tanh %13 : vector<8x64xf32>
    %15 = arith.truncf %14 : vector<8x64xf32> to vector<8x64xbf16>
    %c0_10 = arith.constant 0 : index
    %c0_11 = arith.constant 0 : index
    %16 = vector.load %arg6[%c0_10, %c0_11] : memref<64x4xbf16, #tpu.memory_space<vmem>>, vector<64x4xbf16>
    %cst_12 = arith.constant dense<0.000000e+00> : vector<8x4xf32>
    %17 = tpu.matmul %15, %16, %cst_12 {dimension_numbers = #tpu.dot_dimension_numbers<[1], [0], [0], [1], [0, 0, 1, 1], [], []>} : vector<8x64xbf16>, vector<64x4xbf16>, vector<8x4xf32> -> vector<8x4xf32>
    %c0_13 = arith.constant 0 : index
    %c0_14 = arith.constant 0 : index
    %18 = vector.load %arg7[%c0_13, %c0_14] : memref<1x4xf32, #tpu.memory_space<vmem>>, vector<1x4xf32>
    %19 = vector.broadcast %18 : vector<1x4xf32> to vector<8x4xf32>
    %20 = arith.addf %17, %19 : vector<8x4xf32>
    %c0_15 = arith.constant 0 : index
    %c0_16 = arith.constant 0 : index
    %21 = vector.load %arg8[%c0_15, %c0_16] : memref<8x4xf32, #tpu.memory_space<vmem>>, vector<8x4xf32>
    tpu.vector_store %arg8[%c0_15, %c0_16], %20 {strides = array<i32>} : memref<8x4xf32, #tpu.memory_space<vmem>>, vector<8x4xf32>,
    return
  }
  func.func @transform_0(%arg0: i32) -> (i32, i32) {
    %c0_i32 = arith.constant 0 : i32
    %c0_i32_0 = arith.constant 0 : i32
    return %arg0, %c0_i32 : i32, i32
  }
  func.func @transform_1(%arg0: i32) -> (i32, i32) {
    %c0_i32 = arith.constant 0 : i32
    %c0_i32_0 = arith.constant 0 : i32
    %c0_i32_1 = arith.constant 0 : i32
    return %c0_i32, %c0_i32_0 : i32, i32
  }
  func.func @transform_2(%arg0: i32) -> (i32, i32) {
    %c0_i32 = arith.constant 0 : i32
    %c0_i32_0 = arith.constant 0 : i32
    %c0_i32_1 = arith.constant 0 : i32
    return %c0_i32, %c0_i32_0 : i32, i32
  }
  func.func @transform_3(%arg0: i32) -> (i32, i32) {
    %c0_i32 = arith.constant 0 : i32
    %c0_i32_0 = arith.constant 0 : i32
    %c0_i32_1 = arith.constant 0 : i32
    return %c0_i32, %c0_i32_0 : i32, i32
  }
  func.func @transform_4(%arg0: i32) -> (i32, i32) {
    %c0_i32 = arith.constant 0 : i32
    %c0_i32_0 = arith.constant 0 : i32
    %c0_i32_1 = arith.constant 0 : i32
    return %c0_i32, %c0_i32_0 : i32, i32
  }
  func.func @transform_5(%arg0: i32) -> (i32, i32) {
    %c0_i32 = arith.constant 0 : i32
    %c0_i32_0 = arith.constant 0 : i32
    %c0_i32_1 = arith.constant 0 : i32
    return %c0_i32, %c0_i32_0 : i32, i32
  }
  func.func @transform_6(%arg0: i32) -> (i32, i32) {
    %c0_i32 = arith.constant 0 : i32
    %c0_i32_0 = arith.constant 0 : i32
    %c0_i32_1 = arith.constant 0 : i32
    return %c0_i32, %c0_i32_0 : i32, i32
  }
  func.func @transform_7(%arg0: i32) -> (i32, i32) {
    %c0_i32 = arith.constant 0 : i32
    %c0_i32_0 = arith.constant 0 : i32
    return %arg0, %c0_i32 : i32, i32
  }
}

</mosaic_0001>

<bundles_post_ra>
// kernel: mlp_regression_forward.1
= control target key start
LH: loop header
LB: loop body
LE: loop exit
PB: predicated region body
PF: predicated region fallthrough
CT: control target
= control target key end

     0   :  { %v335_v0 = vmov 0.0   ;;  %vm336_vm0 = vmmov 0   ;;  %vm44_vm1 = vcmask 130048   ;;  %vm129_vm2 = vcmask 523264   ;;  %s421_s1 = inlined_call_operand.vmem [shape: bf16[16,64], index: 1, kind: input, shape index: {}]   ;;  %s422_s0 = inlined_call_operand.vmem [shape: f32[8,16], index: 0, kind: input, shape index: {}]   ;;  %s423_s3 = inlined_call_operand.vmem [shape: bf16[64,64], index: 3, kind: input, shape index: {}]   ;;  %s424_s2 = inlined_call_operand.vmem [shape: f32[1,64], index: 2, kind: input, shape index: {}]   ;;  %s425_s5 = inlined_call_operand.vmem [shape: bf16[64,4], index: 5, kind: input, shape index: {}]   ;;  %s426_s4 = inlined_call_operand.vmem [shape: f32[1,64], index: 4, kind: input, shape index: {}]   ;;  %s427_s6 = inlined_call_operand.vmem [shape: f32[1,4], index: 6, kind: input, shape index: {}]   ;;  %s428_s7 = inlined_call_operand.vmem [shape: f32[8,4], index: 7, kind: output, shape index: {}]  }
   0x1   :  { %290 = vmatprep.subr.bf16.mxu0 %v335_v0  ;;  %v322_v1 = vld [vmem:[%s421_s1] sm:$0xff]   ;;  %292 = vmatprep.mubr.msk.bf16.mxu0 %vm336_vm0, %v335_v0  ;;  %v324_v5 = vld [vmem:[%s423_s3 + $0x8] sm:$0xff]   ;;  %v325_v6 = vld [vmem:[%s423_s3 + $0x10] sm:$0xff]   ;;  %vm257_vm3 = vcmask 31744  }
   0x2   :  { %v27_v2 = vld [vmem:[%s422_s0] sm:$0xff]  ;;  %296 = vmatprep.subr.bf16.mxu1 %v335_v0  ;;  %304 = vmatprep.mubr.msk.bf16.mxu1 %vm336_vm0, %v335_v0  ;;  %v326_v7 = vld [vmem:[%s423_s3 + $0x18] sm:$0xff]   ;;  %v328_v17 = vld [vmem:[%s425_s5 + $0x8] sm:$0xff]  }
   0x3   :  { %291 = vmatpush3.bf16.msra.mxu0 %v322_v1  ;;  %v28_v3 = vpack.c.bf16 %v27_v2, %v27_v2  ;;  %v323_v4 = vld [vmem:[%s423_s3] sm:$0xff]   ;;  %v329_v18 = vld [vmem:[%s425_s5 + $0x10] sm:$0xff]   ;;  %v330_v19 = vld [vmem:[%s425_s5 + $0x18] sm:$0xff]  }
   0x4   :  { %308 = vmatprep.subr.bf16.mxu0 %v335_v0  ;;  %297 = vmatpush3.bf16.msra.mxu1 %v323_v4  ;;  %v263_v8 = vld [vmem:[%s424_s2] ss:$0 sm:$0xff] }
   0x5   :  { %298 = vmatprep.subr.bf16.mxu1 %v335_v0  ;;  %v327_v16 = vld [vmem:[%s425_s5] sm:$0xff]  }
   0x6   :  { %293 = vmatmul.mubr.msk.bf16.vlgmr.msra.gmra.mrb[0].mxu0 %vm44_vm1, %v28_v3  ;;  %v266_v20 = vld [vmem:[%s426_s4] ss:$0 sm:$0xff] }
   0x7   :  { %316 = vmatprep.mubr.msk.bf16.mxu0 %vm336_vm0, %v335_v0  ;;  %309 = vmatpush3.bf16.msra.mxu0 %v327_v16  ;;  %v272_v28 = vld [vmem:[%s427_s6] ss:$0 sm:$0xff] }
   0x8   :  { %299 = vmatpush3.bf16.msra.mxu1 %v324_v5  ;;  %310 = vmatprep.subr.bf16.mxu0 %v335_v0 }
   0x9   :  { %300 = vmatprep.subr.bf16.mxu1 %v335_v0 }
   0xb   :  { %311 = vmatpush3.bf16.msra.mxu0 %v328_v17 }
   0xc   :  { %301 = vmatpush3.bf16.msra.mxu1 %v325_v6  ;;  %312 = vmatprep.subr.bf16.mxu0 %v335_v0 }
   0xd   :  { %302 = vmatprep.subr.bf16.mxu1 %v335_v0 }
   0xf   :  { %313 = vmatpush3.bf16.msra.mxu0 %v329_v18 }
  0x10   :  { %303 = vmatpush3.bf16.msra.mxu1 %v326_v7  ;;  %314 = vmatprep.subr.bf16.mxu0 %v335_v0 }
  0x13   :  { %315 = vmatpush3.bf16.msra.mxu0 %v330_v19 }
  0xd9   :  { %v82_v9 = vpop.f32.mrb[0].mxu0 }
  0xda   :  { %v83_v10 = vadd.f32 %v263_v8, %v82_v9  ;;  %v294_v11 = vpop.f32.mrb[1].mxu0 }
  0xdb   :  { %v85_v12 = vpop.f32.mrb[2].mxu0 }
  0xdc   :  { %331 = vtanh.f32 %v83_v10  ;;  %v295_v13 = vpop.f32.mrb[3].mxu0 }
  0xe6   :  { %v332_v14 = vpop.eup %331 }
  0xe7   :  { %v89_v15 = vpack.c.bf16 %v332_v14, %v332_v14 }
  0xe9   :  { %305 = vmatmul.mubr.msk.bf16.vlgmr.msra.gmra.mrb[0].mxu1 %vm129_vm2, %v89_v15 }
 0x1bc   :  { %v167_v21 = vpop.f32.mrb[0].mxu1 }
 0x1bd   :  { %v168_v22 = vadd.f32 %v266_v20, %v167_v21  ;;  %v306_v23 = vpop.f32.mrb[1].mxu1 }
 0x1be   :  { %v170_v24 = vpop.f32.mrb[2].mxu1 }
 0x1bf   :  { %333 = vtanh.f32 %v168_v22  ;;  %v307_v25 = vpop.f32.mrb[3].mxu1 }
 0x1c9   :  { %v334_v26 = vpop.eup %333 }
 0x1ca   :  { %v174_v27 = vpack.c.bf16 %v334_v26, %v334_v26 }
 0x1cc   :  { %317 = vmatmul.mubr.msk.bf16.vlgmr.msra.gmra.mrb[4].mxu0 %vm129_vm2, %v174_v27 }
 0x29f   :  { %v251_v29 = vpop.f32.mrb[4].mxu0 }
 0x2a0   :  { %v252_v30 = vadd.f32 %v272_v28, %v251_v29  ;;  %v318_v31 = vpop.f32.mrb[5].mxu0 }
 0x2a1   :  { %v254_v32 = vpop.f32.mrb[6].mxu0 }
 0x2a2   :  { %258 = vst.msk [vmem:[%s428_s7] sm:$0xff] %vm257_vm3, %v252_v30  ;;  %v319_v33 = vpop.f32.mrb[7].mxu0 }

</bundles_post_ra>
